<compile_context>
chip_gen: v6e
topology: v6e:2x2x1
jax: 0.10.0
libtpu: 0.0.40
codegen_flags: <defaults>
</compile_context>

<pallas_src>
import functools

import jax
import jax.numpy as jnp
from jax import lax
from jax.experimental import pallas as pl
from jax.experimental.pallas import tpu as pltpu

# ----------------------------- model sizes ---------------------------------
SRC_VOCAB = 20          # source alphabet size
TGT_VOCAB = 16          # target_char_count = len(data.tar_l2i)
EMB = 32                # embedding dim
HID = 32                # GRU hidden dim
START_IDX = 1           # data.tar_l2i[start_token]
PAD_IDX = 0             # data.tar_l2i[pad_token] (not needed for forward)

V_PAD = 128             # lane-dense padded vocab / logits width
G4 = 4 * HID            # 128 = fused gate width [r | z | i_n | h_n]

_VMEM = pl.BlockSpec(memory_space=pltpu.MemorySpace.VMEM)


# ----------------------------- Pallas kernel --------------------------------
def seq2seq_kernel(src_oh_ref, tgt_oh_ref,
                   enc_xw_ref, enc_hw_ref, enc_b_ref,
                   dec_xw_ref, dec_hw_ref, dec_b_ref,
                   fc_w_ref, fc_b_ref,
                   out_ref,
                   *, src_len, tgt_len, teacher_forcing):
    """Fused encoder+decoder forward.

    src_oh: (src_len, N, V_PAD) f32 one-hot source tokens
    tgt_oh: (tgt_len, N, V_PAD) f32 one-hot target tokens
    *_xw:   (V_PAD, 4H)  embedding-folded input-to-gates weights
    *_hw:   (HID,  4H)   hidden-to-gates weights
    *_b:    (1,    4H)   folded gate bias
    fc_w:   (HID, V_PAD) padded output projection, fc_b: (1, V_PAD)
    out:    (tgt_len, N, V_PAD) padded logits slab
    """
    n_batch = out_ref.shape[1]

    def gru(x_oh, h, xw_ref, hw_ref, b_ref):
        # One fused 128-lane gate slab: [r | z | i_n | h_n]  (torch.nn.GRU order)
        g = (jnp.dot(x_oh, xw_ref[...], preferred_element_type=jnp.float32)
             + jnp.dot(h, hw_ref[...], preferred_element_type=jnp.float32)
             + b_ref[...])
        r = jax.nn.sigmoid(g[:, 0 * HID:1 * HID])
        z = jax.nn.sigmoid(g[:, 1 * HID:2 * HID])
        n = jnp.tanh(g[:, 2 * HID:3 * HID] + r * g[:, 3 * HID:4 * HID])
        return (1.0 - z) * n + z * h

    # ---- encoder: single-layer unidirectional GRU over source tokens ----
    def enc_body(t, h):
        return gru(src_oh_ref[t], h, enc_xw_ref, enc_hw_ref, enc_b_ref)

    h0 = jnp.zeros((n_batch, HID), jnp.float32)
    h_enc = lax.fori_loop(0, src_len, enc_body, h0)

    # outputs[0] keeps the start-token one-hot (reference init, never overwritten)
    col = lax.broadcasted_iota(jnp.int32, (n_batch, V_PAD), 1)
    out_ref[0] = (col == START_IDX).astype(jnp.float32)

    # ---- decoder: GRU + output projection + greedy / teacher-forced feedback ----
    def dec_body(t, carry):
        x_oh, h = carry
        h_new = gru(x_oh, h, dec_xw_ref, dec_hw_ref, dec_b_ref)
        logits = (jnp.dot(h_new, fc_w_ref[...], preferred_element_type=jnp.float32)
                  + fc_b_ref[...])                                # (N, V_PAD)
        out_ref[t] = logits
        if teacher_forcing:
            next_oh = tgt_oh_ref[t]
        else:
            # in-kernel argmax over the valid TGT_VOCAB columns -> next one-hot
            masked = jnp.where(col < TGT_VOCAB, logits, -jnp.inf)
            row_max = jnp.max(masked, axis=1, keepdims=True)
            cand = jnp.where(masked == row_max, col, V_PAD)
            best = jnp.min(cand, axis=1, keepdims=True)           # first argmax
            next_oh = (col == best).astype(jnp.float32)
        return (next_oh, h_new)

    lax.fori_loop(1, tgt_len, dec_body, (tgt_oh_ref[0], h_enc))


# ----------------------------- parameters ----------------------------------
def init_params(key):
    ks = jax.random.split(key, 12)
    s = 1.0 / jnp.sqrt(jnp.float32(HID))

    def u(k, shape):
        return jax.random.uniform(k, shape, jnp.float32, -s, s)

    return {
        "enc_emb": u(ks[0], (SRC_VOCAB, EMB)),
        "enc_wih": u(ks[1], (EMB, 3 * HID)),
        "enc_whh": u(ks[2], (HID, 3 * HID)),
        "enc_bih": u(ks[3], (3 * HID,)),
        "enc_bhh": u(ks[4], (3 * HID,)),
        "dec_emb": u(ks[5], (TGT_VOCAB, EMB)),
        "dec_wih": u(ks[6], (EMB, 3 * HID)),
        "dec_whh": u(ks[7], (HID, 3 * HID)),
        "dec_bih": u(ks[8], (3 * HID,)),
        "dec_bhh": u(ks[9], (3 * HID,)),
        "fc_w": u(ks[10], (HID, TGT_VOCAB)),
        "fc_b": u(ks[11], (TGT_VOCAB,)),
        # TODO(synk): enc_to_dec Linear is defined in the reference __init__ but
        # never used in its forward pass, so it is intentionally omitted here.
    }


def _fuse_gru_weights(emb_pad, wih, whh, bih, bhh):
    """Build the lane-dense [r | z | i_n | h_n] fused weights with the
    embedding folded into the input-to-gates matrix."""
    zx = jnp.zeros((EMB, HID), jnp.float32)
    zh = jnp.zeros((HID, HID), jnp.float32)
    wx = jnp.concatenate(
        [wih[:, :HID], wih[:, HID:2 * HID], wih[:, 2 * HID:], zx], axis=1)   # (E, 4H)
    wh = jnp.concatenate(
        [whh[:, :HID], whh[:, HID:2 * HID], zh, whh[:, 2 * HID:]], axis=1)   # (H, 4H)
    b = jnp.concatenate(
        [bih[:HID] + bhh[:HID],
         bih[HID:2 * HID] + bhh[HID:2 * HID],
         bih[2 * HID:],
         bhh[2 * HID:]])[None, :]                                            # (1, 4H)
    xw = jnp.dot(emb_pad, wx)                                                # (V_PAD, 4H)
    return xw, wh, b


# ----------------------------- forward --------------------------------------
@functools.partial(jax.jit, static_argnames=("teacher_forcing",))
def seq2seq_forward(params, source, target, teacher_forcing=False):
    """source: (src_len, N) int32; target: (tgt_len, N) int32.

    Returns (tgt_len, N, TGT_VOCAB) f32, matching the reference:
      outputs[0, :, START_IDX] = 1 (rest of row 0 zero),
      outputs[t >= 1] = decoder logits at step t.
    """
    src_len, n = source.shape
    tgt_len = target.shape[0]

    enc_emb_pad = jnp.zeros((V_PAD, EMB), jnp.float32).at[:SRC_VOCAB].set(params["enc_emb"])
    dec_emb_pad = jnp.zeros((V_PAD, EMB), jnp.float32).at[:TGT_VOCAB].set(params["dec_emb"])

    enc_xw, enc_hw, enc_b = _fuse_gru_weights(
        enc_emb_pad, params["enc_wih"], params["enc_whh"],
        params["enc_bih"], params["enc_bhh"])
    dec_xw, dec_hw, dec_b = _fuse_gru_weights(
        dec_emb_pad, params["dec_wih"], params["dec_whh"],
        params["dec_bih"], params["dec_bhh"])

    fc_w = jnp.zeros((HID, V_PAD), jnp.float32).at[:, :TGT_VOCAB].set(params["fc_w"])
    fc_b = jnp.zeros((1, V_PAD), jnp.float32).at[0, :TGT_VOCAB].set(params["fc_b"])

    src_oh = jax.nn.one_hot(source, V_PAD, dtype=jnp.float32)   # (src_len, N, V_PAD)
    tgt_oh = jax.nn.one_hot(target, V_PAD, dtype=jnp.float32)   # (tgt_len, N, V_PAD)

    kernel = functools.partial(seq2seq_kernel,
                               src_len=src_len, tgt_len=tgt_len,
                               teacher_forcing=teacher_forcing)

    out_pad = pl.pallas_call(
        kernel,
        out_shape=jax.ShapeDtypeStruct((tgt_len, n, V_PAD), jnp.float32),
        in_specs=[_VMEM] * 10,
        out_specs=_VMEM,
    )(src_oh, tgt_oh, enc_xw, enc_hw, enc_b, dec_xw, dec_hw, dec_b, fc_w, fc_b)

    return out_pad[:, :, :TGT_VOCAB]


# ----------------------------- pure-JAX reference ---------------------------
def seq2seq_reference(params, source, target, teacher_forcing=True):
    src_len, n = source.shape
    tgt_len = target.shape[0]

    def gru_cell(x, h, wih, whh, bih, bhh):
        gi = x @ wih + bih
        gh = h @ whh + bhh
        r = jax.nn.sigmoid(gi[:, :HID] + gh[:, :HID])
        z = jax.nn.sigmoid(gi[:, HID:2 * HID] + gh[:, HID:2 * HID])
        nn_ = jnp.tanh(gi[:, 2 * HID:] + r * gh[:, 2 * HID:])
        return (1.0 - z) * nn_ + z * h

    h = jnp.zeros((n, HID), jnp.float32)
    for t in range(src_len):
        x = params["enc_emb"][source[t]]
        h = gru_cell(x, h, params["enc_wih"], params["enc_whh"],
                     params["enc_bih"], params["enc_bhh"])

    outputs = jnp.zeros((tgt_len, n, TGT_VOCAB), jnp.float32)
    outputs = outputs.at[:, :, START_IDX].set(1.0)
    x_tok = target[0]
    for t in range(1, tgt_len):
        emb = params["dec_emb"][x_tok]
        h = gru_cell(emb, h, params["dec_wih"], params["dec_whh"],
                     params["dec_bih"], params["dec_bhh"])
        logits = emb @ jnp.zeros((EMB, TGT_VOCAB)) if False else (h @ params["fc_w"] + params["fc_b"])
        outputs = outputs.at[t].set(logits)
        best = jnp.argmax(logits, axis=1).astype(x_tok.dtype)
        x_tok = target[t] if teacher_forcing else best
    return outputs


# ----------------------------- main ------------------------------------------
if __name__ == "__main__":
    key = jax.random.PRNGKey(0)
    k_params, k_src, k_tgt = jax.random.split(key, 3)

    params = init_params(k_params)

    SRC_LEN, TGT_LEN, BATCH = 10, 8, 8
    source = jax.random.randint(k_src, (SRC_LEN, BATCH), 0, SRC_VOCAB, jnp.int32)
    target = jax.random.randint(k_tgt, (TGT_LEN, BATCH), 0, TGT_VOCAB, jnp.int32)

    # greedy-feedback path (teacher_forcing=False)
    out = seq2seq_forward(params, source, target, teacher_forcing=False)
    jax.block_until_ready(out)
    assert out.shape == (TGT_LEN, BATCH, TGT_VOCAB)
    assert bool(jnp.all(jnp.isfinite(out)))

    # teacher-forcing path + numerical check against pure-JAX reference
    out_tf = seq2seq_forward(params, source, target, teacher_forcing=True)
    jax.block_until_ready(out_tf)
    assert out_tf.shape == (TGT_LEN, BATCH, TGT_VOCAB)

    ref_tf = seq2seq_reference(params, source, target, teacher_forcing=True)
    max_err = float(jnp.max(jnp.abs(out_tf - ref_tf)))
    assert max_err < 5e-2, f"kernel vs reference max abs error {max_err}"

    print("KERNEL_OK")
</pallas_src>

<mosaic_0001>
module attributes {stable_mosaic.version = 11 : i64} {
  func.func @seq2seq_kernel(%arg0: memref<10x8x128xf32, #tpu.memory_space<vmem>>, %arg1: memref<8x8x128xf32, #tpu.memory_space<vmem>>, %arg2: memref<128x128xf32, #tpu.memory_space<vmem>>, %arg3: memref<32x128xf32, #tpu.memory_space<vmem>>, %arg4: memref<1x128xf32, #tpu.memory_space<vmem>>, %arg5: memref<128x128xf32, #tpu.memory_space<vmem>>, %arg6: memref<32x128xf32, #tpu.memory_space<vmem>>, %arg7: memref<1x128xf32, #tpu.memory_space<vmem>>, %arg8: memref<32x128xf32, #tpu.memory_space<vmem>>, %arg9: memref<1x128xf32, #tpu.memory_space<vmem>>, %arg10: memref<8x8x128xf32, #tpu.memory_space<vmem>>) attributes {dimension_semantics = [], scalar_prefetch = 0 : i64, scratch_operands = 0 : i64, tpu.core_type = #tpu.core_type<tc>} {
    %cst = arith.constant 0.000000e+00 : f32
    %0 = vector.broadcast %cst : f32 to vector<8x32xf32>
    %c0_i32 = arith.constant 0 : i32
    %c10_i32 = arith.constant 10 : i32
    %1 = arith.addi %c0_i32, %c10_i32 : i32
    %c1_i32 = arith.constant 1 : i32
    %2 = scf.for %arg11 = %c0_i32 to %1 step %c1_i32 iter_args(%arg12 = %0) -> (vector<8x32xf32>)  : i32 {
      %15 = arith.index_cast %arg11 : i32 to index
      %c0_10 = arith.constant 0 : index
      %c0_11 = arith.constant 0 : index
      %16 = vector.load %arg0[%15, %c0_10, %c0_11] : memref<10x8x128xf32, #tpu.memory_space<vmem>>, vector<1x8x128xf32>
      %17 = vector.shape_cast %16 : vector<1x8x128xf32> to vector<8x128xf32>
      %c0_12 = arith.constant 0 : index
      %c0_13 = arith.constant 0 : index
      %18 = vector.load %arg2[%c0_12, %c0_13] : memref<128x128xf32, #tpu.memory_space<vmem>>, vector<128x128xf32>
      %cst_14 = arith.constant dense<0.000000e+00> : vector<8x128xf32>
      %19 = tpu.matmul %17, %18, %cst_14 {dimension_numbers = #tpu.dot_dimension_numbers<[1], [0], [0], [1], [0, 0, 1, 1], [], []>} : vector<8x128xf32>, vector<128x128xf32>, vector<8x128xf32> -> vector<8x128xf32>
      %c0_15 = arith.constant 0 : index
      %c0_16 = arith.constant 0 : index
      %20 = vector.load %arg3[%c0_15, %c0_16] : memref<32x128xf32, #tpu.memory_space<vmem>>, vector<32x128xf32>
      %cst_17 = arith.constant dense<0.000000e+00> : vector<8x128xf32>
      %21 = tpu.matmul %arg12, %20, %cst_17 {dimension_numbers = #tpu.dot_dimension_numbers<[1], [0], [0], [1], [0, 0, 1, 1], [], []>} : vector<8x32xf32>, vector<32x128xf32>, vector<8x128xf32> -> vector<8x128xf32>
      %22 = arith.addf %19, %21 : vector<8x128xf32>
      %c0_18 = arith.constant 0 : index
      %c0_19 = arith.constant 0 : index
      %23 = vector.load %arg4[%c0_18, %c0_19] : memref<1x128xf32, #tpu.memory_space<vmem>>, vector<1x128xf32>
      %24 = vector.broadcast %23 : vector<1x128xf32> to vector<8x128xf32>
      %25 = arith.addf %22, %24 : vector<8x128xf32>
      %26 = vector.extract_strided_slice %25 {offsets = [0, 0], sizes = [8, 32], strides = [1, 1]} : vector<8x128xf32> to vector<8x32xf32>
      %27 = arith.negf %26 : vector<8x32xf32>
      %28 = math.exp %27 : vector<8x32xf32>
      %cst_20 = arith.constant 1.000000e+00 : f32
      %29 = vector.broadcast %cst_20 : f32 to vector<8x32xf32>
      %30 = arith.addf %29, %28 : vector<8x32xf32>
      %31 = arith.divf %29, %30 : vector<8x32xf32>
      %32 = vector.extract_strided_slice %25 {offsets = [0, 32], sizes = [8, 32], strides = [1, 1]} : vector<8x128xf32> to vector<8x32xf32>
      %33 = arith.negf %32 : vector<8x32xf32>
      %34 = math.exp %33 : vector<8x32xf32>
      %cst_21 = arith.constant 1.000000e+00 : f32
      %35 = vector.broadcast %cst_21 : f32 to vector<8x32xf32>
      %36 = arith.addf %35, %34 : vector<8x32xf32>
      %37 = arith.divf %35, %36 : vector<8x32xf32>
      %38 = vector.extract_strided_slice %25 {offsets = [0, 64], sizes = [8, 32], strides = [1, 1]} : vector<8x128xf32> to vector<8x32xf32>
      %39 = vector.extract_strided_slice %25 {offsets = [0, 96], sizes = [8, 32], strides = [1, 1]} : vector<8x128xf32> to vector<8x32xf32>
      %40 = arith.mulf %31, %39 : vector<8x32xf32>
      %41 = arith.addf %38, %40 : vector<8x32xf32>
      %42 = math.tanh %41 : vector<8x32xf32>
      %cst_22 = arith.constant 1.000000e+00 : f32
      %43 = vector.broadcast %cst_22 : f32 to vector<8x32xf32>
      %44 = arith.subf %43, %37 : vector<8x32xf32>
      %45 = arith.mulf %44, %42 : vector<8x32xf32>
      %46 = arith.mulf %37, %arg12 : vector<8x32xf32>
      %47 = arith.addf %45, %46 : vector<8x32xf32>
      scf.yield %47 : vector<8x32xf32>
    }
    %c10_i32_0 = arith.constant 10 : i32
    %3 = tpu.iota {dimensions = array<i32: 1>} : vector<8x128xi32>
    %c1_i32_1 = arith.constant 1 : i32
    %4 = vector.broadcast %c1_i32_1 : i32 to vector<8x128xi32>
    %5 = arith.cmpi eq, %3, %4 : vector<8x128xi32>
    %6 = arith.extui %5 : vector<8x128xi1> to vector<8x128xi32>
    %7 = arith.sitofp %6 : vector<8x128xi32> to vector<8x128xf32>
    %c0 = arith.constant 0 : index
    %c0_2 = arith.constant 0 : index
    %c0_3 = arith.constant 0 : index
    %8 = vector.load %arg10[%c0, %c0_2, %c0_3] : memref<8x8x128xf32, #tpu.memory_space<vmem>>, vector<1x8x128xf32>
    %9 = vector.shape_cast %8 : vector<1x8x128xf32> to vector<8x128xf32>
    %10 = vector.shape_cast %7 : vector<8x128xf32> to vector<1x8x128xf32>
    tpu.vector_store %arg10[%c0, %c0_2, %c0_3], %10 {strides = array<i32>} : memref<8x8x128xf32, #tpu.memory_space<vmem>>, vector<1x8x128xf32>,
    %c0_4 = arith.constant 0 : index
    %c0_5 = arith.constant 0 : index
    %c0_6 = arith.constant 0 : index
    %11 = vector.load %arg1[%c0_4, %c0_5, %c0_6] : memref<8x8x128xf32, #tpu.memory_space<vmem>>, vector<1x8x128xf32>
    %12 = vector.shape_cast %11 : vector<1x8x128xf32> to vector<8x128xf32>
    %c1_i32_7 = arith.constant 1 : i32
    %c7_i32 = arith.constant 7 : i32
    %13 = arith.addi %c1_i32_7, %c7_i32 : i32
    %c1_i32_8 = arith.constant 1 : i32
    %14:2 = scf.for %arg11 = %c1_i32_7 to %13 step %c1_i32_8 iter_args(%arg12 = %12, %arg13 = %2) -> (vector<8x128xf32>, vector<8x32xf32>)  : i32 {
      %c0_10 = arith.constant 0 : index
      %c0_11 = arith.constant 0 : index
      %15 = vector.load %arg5[%c0_10, %c0_11] : memref<128x128xf32, #tpu.memory_space<vmem>>, vector<128x128xf32>
      %cst_12 = arith.constant dense<0.000000e+00> : vector<8x128xf32>
      %16 = tpu.matmul %arg12, %15, %cst_12 {dimension_numbers = #tpu.dot_dimension_numbers<[1], [0], [0], [1], [0, 0, 1, 1], [], []>} : vector<8x128xf32>, vector<128x128xf32>, vector<8x128xf32> -> vector<8x128xf32>
      %c0_13 = arith.constant 0 : index
      %c0_14 = arith.constant 0 : index
      %17 = vector.load %arg6[%c0_13, %c0_14] : memref<32x128xf32, #tpu.memory_space<vmem>>, vector<32x128xf32>
      %cst_15 = arith.constant dense<0.000000e+00> : vector<8x128xf32>
      %18 = tpu.matmul %arg13, %17, %cst_15 {dimension_numbers = #tpu.dot_dimension_numbers<[1], [0], [0], [1], [0, 0, 1, 1], [], []>} : vector<8x32xf32>, vector<32x128xf32>, vector<8x128xf32> -> vector<8x128xf32>
      %19 = arith.addf %16, %18 : vector<8x128xf32>
      %c0_16 = arith.constant 0 : index
      %c0_17 = arith.constant 0 : index
      %20 = vector.load %arg7[%c0_16, %c0_17] : memref<1x128xf32, #tpu.memory_space<vmem>>, vector<1x128xf32>
      %21 = vector.broadcast %20 : vector<1x128xf32> to vector<8x128xf32>
      %22 = arith.addf %19, %21 : vector<8x128xf32>
      %23 = vector.extract_strided_slice %22 {offsets = [0, 0], sizes = [8, 32], strides = [1, 1]} : vector<8x128xf32> to vector<8x32xf32>
      %24 = arith.negf %23 : vector<8x32xf32>
      %25 = math.exp %24 : vector<8x32xf32>
      %cst_18 = arith.constant 1.000000e+00 : f32
      %26 = vector.broadcast %cst_18 : f32 to vector<8x32xf32>
      %27 = arith.addf %26, %25 : vector<8x32xf32>
      %28 = arith.divf %26, %27 : vector<8x32xf32>
      %29 = vector.extract_strided_slice %22 {offsets = [0, 32], sizes = [8, 32], strides = [1, 1]} : vector<8x128xf32> to vector<8x32xf32>
      %30 = arith.negf %29 : vector<8x32xf32>
      %31 = math.exp %30 : vector<8x32xf32>
      %cst_19 = arith.constant 1.000000e+00 : f32
      %32 = vector.broadcast %cst_19 : f32 to vector<8x32xf32>
      %33 = arith.addf %32, %31 : vector<8x32xf32>
      %34 = arith.divf %32, %33 : vector<8x32xf32>
      %35 = vector.extract_strided_slice %22 {offsets = [0, 64], sizes = [8, 32], strides = [1, 1]} : vector<8x128xf32> to vector<8x32xf32>
      %36 = vector.extract_strided_slice %22 {offsets = [0, 96], sizes = [8, 32], strides = [1, 1]} : vector<8x128xf32> to vector<8x32xf32>
      %37 = arith.mulf %28, %36 : vector<8x32xf32>
      %38 = arith.addf %35, %37 : vector<8x32xf32>
      %39 = math.tanh %38 : vector<8x32xf32>
      %cst_20 = arith.constant 1.000000e+00 : f32
      %40 = vector.broadcast %cst_20 : f32 to vector<8x32xf32>
      %41 = arith.subf %40, %34 : vector<8x32xf32>
      %42 = arith.mulf %41, %39 : vector<8x32xf32>
      %43 = arith.mulf %34, %arg13 : vector<8x32xf32>
      %44 = arith.addf %42, %43 : vector<8x32xf32>
      %c0_21 = arith.constant 0 : index
      %c0_22 = arith.constant 0 : index
      %45 = vector.load %arg8[%c0_21, %c0_22] : memref<32x128xf32, #tpu.memory_space<vmem>>, vector<32x128xf32>
      %cst_23 = arith.constant dense<0.000000e+00> : vector<8x128xf32>
      %46 = tpu.matmul %44, %45, %cst_23 {dimension_numbers = #tpu.dot_dimension_numbers<[1], [0], [0], [1], [0, 0, 1, 1], [], []>} : vector<8x32xf32>, vector<32x128xf32>, vector<8x128xf32> -> vector<8x128xf32>
      %c0_24 = arith.constant 0 : index
      %c0_25 = arith.constant 0 : index
      %47 = vector.load %arg9[%c0_24, %c0_25] : memref<1x128xf32, #tpu.memory_space<vmem>>, vector<1x128xf32>
      %48 = vector.broadcast %47 : vector<1x128xf32> to vector<8x128xf32>
      %49 = arith.addf %46, %48 : vector<8x128xf32>
      %50 = arith.index_cast %arg11 : i32 to index
      %c0_26 = arith.constant 0 : index
      %c0_27 = arith.constant 0 : index
      %51 = vector.load %arg10[%50, %c0_26, %c0_27] : memref<8x8x128xf32, #tpu.memory_space<vmem>>, vector<1x8x128xf32>
      %52 = vector.shape_cast %51 : vector<1x8x128xf32> to vector<8x128xf32>
      %53 = vector.shape_cast %49 : vector<8x128xf32> to vector<1x8x128xf32>
      tpu.vector_store %arg10[%50, %c0_26, %c0_27], %53 {strides = array<i32>} : memref<8x8x128xf32, #tpu.memory_space<vmem>>, vector<1x8x128xf32>,
      %c16_i32 = arith.constant 16 : i32
      %54 = vector.broadcast %c16_i32 : i32 to vector<8x128xi32>
      %55 = arith.cmpi slt, %3, %54 : vector<8x128xi32>
      %cst_28 = arith.constant 0xFF800000 : f32
      %56 = vector.broadcast %cst_28 : f32 to vector<8x128xf32>
      %57 = arith.select %55, %49, %56 : vector<8x128xi1>, vector<8x128xf32>
      %cst_29 = arith.constant dense<0xFF800000> : vector<8xf32>
      %58 = vector.multi_reduction <maximumf>, %57, %cst_29 [1] : vector<8x128xf32> to vector<8xf32>
      %59 = vector.shape_cast %58 : vector<8xf32> to vector<8x1xf32>
      %60 = vector.broadcast %59 : vector<8x1xf32> to vector<8x128xf32>
      %61 = arith.cmpf oeq, %57, %60 : vector<8x128xf32>
      %c128_i32 = arith.constant 128 : i32
      %62 = vector.broadcast %c128_i32 : i32 to vector<8x128xi32>
      %63 = arith.select %61, %3, %62 : vector<8x128xi1>, vector<8x128xi32>
      %cst_30 = arith.constant dense<2147483647> : vector<8xi32>
      %64 = vector.multi_reduction <minsi>, %63, %cst_30 [1] : vector<8x128xi32> to vector<8xi32>
      %65 = vector.shape_cast %64 : vector<8xi32> to vector<8x1xi32>
      %66 = vector.broadcast %65 : vector<8x1xi32> to vector<8x128xi32>
      %67 = arith.cmpi eq, %3, %66 : vector<8x128xi32>
      %68 = arith.extui %67 : vector<8x128xi1> to vector<8x128xi32>
      %69 = arith.sitofp %68 : vector<8x128xi32> to vector<8x128xf32>
      scf.yield %69, %44 : vector<8x128xf32>, vector<8x32xf32>
    }
    %c7_i32_9 = arith.constant 7 : i32
    return
  }
}

</mosaic_0001>

<bundles_post_ra>
// kernel: seq2seq_forward.1
= control target key start
LH: loop header
LB: loop body
LE: loop exit
PB: predicated region body
PF: predicated region fallthrough
CT: control target
= control target key end

     0   :  { %15 = vsyncpa [#allocation3], 0  ;;  %v971_v0 = vmov 0.0   ;;  %s973_s13 = smov 0   ;;  %s1232_s0 = inlined_call_operand.vmem [shape: f32[10,8,128], index: 0, kind: input, shape index: {}]   ;;  %s1233_s1 = inlined_call_operand.vmem [shape: f32[8,8,128], index: 1, kind: input, shape index: {}]   ;;  %s1234_s2 = inlined_call_operand.vmem [shape: f32[128,128], index: 2, kind: input, shape index: {}]   ;;  %s1235_s3 = inlined_call_operand.vmem [shape: f32[32,128], index: 3, kind: input, shape index: {}]   ;;  %s1236_s4 = inlined_call_operand.vmem [shape: f32[1,128], index: 4, kind: input, shape index: {}]   ;;  %s1237_s5 = inlined_call_operand.vmem [shape: f32[128,128], index: 5, kind: input, shape index: {}]   ;;  %s1238_s6 = inlined_call_operand.vmem [shape: f32[32,128], index: 6, kind: input, shape index: {}]   ;;  %s1239_s7 = inlined_call_operand.vmem [shape: f32[1,128], index: 7, kind: input, shape index: {}]   ;;  %s1240_s8 = inlined_call_operand.vmem [shape: f32[32,128], index: 8, kind: input, shape index: {}]   ;;  %s1241_s9 = inlined_call_operand.vmem [shape: f32[1,128], index: 9, kind: input, shape index: {}]   ;;  %s1242_s10 = inlined_call_operand.hbm [shape: f32[8,8,128], index: 10, kind: output, shape index: {}]  }
   0x1 LB: > { %v61_v1 = vld [vmem:[%s1234_s2 + $0x78] sm:$0xff]  ;;  %v902_v2 = vmov 0.0   ;;  %v60_v3 = vld [vmem:[%s1234_s2 + $0x70] sm:$0xff]  ;;  %s903_s18 = smov 96   ;;  %v59_v4 = vld [vmem:[%s1234_s2 + $0x68] sm:$0xff]  ;;  %vm904_vm0 = vmmov 0   ;;  %s888_s13 = sphi %s973_s13, %s41_s13   ;;  %v884_v0 = vphi %v971_v0, %v1243_v0  }
   0x2   : > { %682 = vmatprep.subr.mxu1 %v902_v2  ;;  %671 = vmatprep.subr.mxu0 %v902_v2  ;;  %v65_v5 = vld [vmem:[%s1235_s3 + $0x18] sm:$0xff]  ;;  %v58_v6 = vld [vmem:[%s1234_s2 + $0x60] sm:$0xff]  ;;  %v64_v7 = vld [vmem:[%s1235_s3 + $0x10] sm:$0xff]  ;;  %s610_s11 = sshll.u32 %s888_s13, 3  ;;  %vm69_vm1 = vcmask 261120   ;;  %s905_s25 = smov 32  }
   0x3   : > { %67 = vrot.lane.b32.xlu0 %v884_v0, %s903_s18  ;;  %683 = vmatpush3.msra.mxu1 %v61_v1  ;;  %v63_v8 = vld [vmem:[%s1235_s3 + $0x8] sm:$0xff]  ;;  %v57_v9 = vld [vmem:[%s1234_s2 + $0x58] sm:$0xff]  ;;  %v62_v10 = vld [vmem:[%s1235_s3] sm:$0xff]  ;;  %s44_s20 = scalar_lea.vmem %s1232_s0, %s610_s11  ;;  %s906_s26 = smov 64  }
   0x4   : > { %684 = vmatprep.subr.mxu1 %v902_v2  ;;  %714 = vmatprep.mubr.msk.f32.mxu1 %vm904_vm0, %v902_v2  ;;  %v56_v11 = vld [vmem:[%s1234_s2 + $0x50] sm:$0xff]  ;;  %v55_v12 = vld [vmem:[%s1234_s2 + $0x48] sm:$0xff]  ;;  %v54_v13 = vld [vmem:[%s1234_s2 + $0x40] sm:$0xff]  ;;  %s41_s13 = sadd.s32 1, %s888_s13  }
   0x5   : > { %685 = vmatpush3.msra.mxu1 %v60_v3  ;;  %679 = vmatprep.mubr.msk.f32.mxu0 %vm904_vm0, %v902_v2  ;;  %v53_v14 = vld [vmem:[%s1234_s2 + $0x38] sm:$0xff]  ;;  %v52_v15 = vld [vmem:[%s1234_s2 + $0x30] sm:$0xff]  ;;  %v51_v16 = vld [vmem:[%s1234_s2 + $0x28] sm:$0xff]  ;;  %p38_p0 = scmp.ge.s32.totalorder %s41_s13, 10  }
   0x6   : > { %686 = vmatprep.subr.mxu1 %v902_v2  ;;  %672 = vmatpush3.msra.mxu0 %v65_v5  ;;  %v50_v17 = vld [vmem:[%s1234_s2 + $0x20] sm:$0xff]  ;;  %v49_v18 = vld [vmem:[%s1234_s2 + $0x18] sm:$0xff]  ;;  %v48_v19 = vld [vmem:[%s1234_s2 + $0x10] sm:$0xff]  ;;  %v245_v45 = vlaneseq (%p38_p0)  ;;  %v907_v48 = vmov (%p38_p0), 0.0  }
   0x7   : > { %687 = vmatpush3.msra.mxu1 %v59_v4  ;;  %673 = vmatprep.subr.mxu0 %v902_v2  ;;  %v47_v20 = vld [vmem:[%s1234_s2 + $0x8] sm:$0xff]  ;;  %v46_v21 = vld [vmem:[%s1234_s2] sm:$0xff] }
   0x8   : > { %688 = vmatprep.subr.mxu1 %v902_v2  ;;  %674 = vmatpush3.msra.mxu0 %v64_v7  ;;  %v45_v22 = vld [vmem:[%s44_s20] sm:$0xff]  ;;  %v1083_v47 = vand.u32 (%p38_p0), 127, %v245_v45 }
   0x9   : > { %689 = vmatpush3.msra.mxu1 %v58_v6  ;;  %675 = vmatprep.subr.mxu0 %v902_v2  ;;  %v612_v27 = vld [vmem:[%s1236_s4] ss:$0 sm:$0xff] }
   0xa   : > { %690 = vmatprep.subr.mxu1 %v902_v2  ;;  %676 = vmatpush3.msra.mxu0 %v63_v8  ;;  %v251_v46 = vld [vmem:[%s1233_s1] sm:$0xff] (%p38_p0)   ;;  %vm247_vm2 = vcmp.eq.s32.totalorder (%p38_p0), %v1083_v47, 1 }
   0xb   : > { %691 = vmatpush3.msra.mxu1 %v57_v9  ;;  %677 = vmatprep.subr.mxu0 %v902_v2  ;;  %v614_v49 = vsel (%p38_p0), %vm247_vm2, 1.0, %v907_v48 }
   0xc   : > { %692 = vmatprep.subr.mxu1 %v902_v2  ;;  %678 = vmatpush3.msra.mxu0 %v62_v10  ;;  %250 = vst [vmem:[#allocation2] sm:$0xff] (%p38_p0), %v614_v49 }
   0xd   : > { %693 = vmatpush3.msra.mxu1 %v56_v11 }
   0xe   : > { %694 = vmatprep.subr.mxu1 %v902_v2 }
   0xf   : > { %695 = vmatpush3.msra.mxu1 %v55_v12 }
  0x10   : > { %696 = vmatprep.subr.mxu1 %v902_v2 }
  0x11   : > { %697 = vmatpush3.msra.mxu1 %v54_v13 }
  0x12   : > { %698 = vmatprep.subr.mxu1 %v902_v2 }
  0x13   : > { %699 = vmatpush3.msra.mxu1 %v53_v14 }
  0x14   : > { %700 = vmatprep.subr.mxu1 %v902_v2 }
  0x15   : > { %701 = vmatpush3.msra.mxu1 %v52_v15 }
  0x16   : > { %702 = vmatprep.subr.mxu1 %v902_v2 }
  0x17   : > { %703 = vmatpush3.msra.mxu1 %v51_v16 }
  0x18   : > { %704 = vmatprep.subr.mxu1 %v902_v2 }
  0x19   : > { %705 = vmatpush3.msra.mxu1 %v50_v17 }
  0x1a   : > { %706 = vmatprep.subr.mxu1 %v902_v2 }
  0x1b   : > { %707 = vmatpush3.msra.mxu1 %v49_v18 }
  0x1c   : > { %708 = vmatprep.subr.mxu1 %v902_v2 }
  0x1d   : > { %709 = vmatpush3.msra.mxu1 %v48_v19 }
  0x1e   : > { %710 = vmatprep.subr.mxu1 %v902_v2 }
  0x1f   : > { %711 = vmatpush3.msra.mxu1 %v47_v20 }
  0x20   : > { %712 = vmatprep.subr.mxu1 %v902_v2 }
  0x21   : > { %713 = vmatpush3.msra.mxu1 %v46_v21 }
  0x22   : > { %715 = vmatmul.mubr.f32.vlgmr.msra.gmra.mxu1 %v45_v22 }
  0x75   : > { %v68_v23 = vpop.permute.xlu0 %67 }
  0x76   : > { %680 = vmatmul.mubr.msk.f32.vlgmr.msra.gmra.mxu0 %vm69_vm1, %v68_v23 }
  0xe2   : > { %v208_v24 = vpop.f32.mrf.mxu1 }
  0xe4   : > { %v716_v25 = vpop.f32.mrf.mxu1 }
 0x136   : > { %v138_v26 = vpop.f32.mrf.mxu0 }
 0x137   : > { %v209_v28 = vadd.f32 %v208_v24, %v138_v26 }
 0x138   : > { %v681_v29 = vpop.f32.mrf.mxu0 }
 0x139   : > { %v219_v30 = vadd.f32 %v612_v27, %v209_v28 }
 0x13b   : > { %227 = vrot.lane.b32.xlu0 %v219_v30, %s905_s25  ;;  %v613_v31 = vmul.f32 -1.442695, %v219_v30 }
 0x13d   : > { %828 = vpow2.f32 %v613_v31 }
 0x14a   : > { %v829_v32 = vpop.eup %828 }
 0x14b   : > { %v223_v33 = vadd.f32 1.0, %v829_v32 }
 0x14d   : > { %830 = vrcp.f32 %v223_v33 }
 0x15a   : > { %v831_v34 = vpop.eup %830 }
 0x15b   : > { %v237_v40 = vsub.f32 1.0, %v831_v34  ;;  %v243_v42 = vmul.f32 %v884_v0, %v831_v34 }
 0x1ad   : > { %v228_v35 = vpop.permute.xlu0 %227 }
 0x1ae   : > { %v230_v36 = vmul.f32 %v831_v34, %v228_v35 }
 0x1b0   : > { %232 = vrot.lane.b32.xlu1 %v230_v36, %s906_s26 }
 0x222   : > { %v233_v37 = vpop.permute.xlu1 %232 }
 0x223   : > { %v235_v38 = vadd.f32 %v233_v37, %v219_v30 }
 0x225   : > { %832 = vtanh.f32 %v235_v38 }
 0x232   : > { %v833_v39 = vpop.eup %832 }
 0x233   : > { %239 = vrot.lane.b32.xlu1 %v833_v39, %s903_s18  ;;  %s1090_s18 = smov (%p38_p0), 1  }
 0x2a5   : > { %v240_v41 = vpop.permute.xlu1 %239 }
 0x2a6   : > { %v242_v43 = vmul.f32 %v240_v41, %v237_v40  ;;  %40 = sbr.rel (!%p38_p0) target bundleno = 1 (0x1), region = 76 }
 0x2a8   : > { %v244_v44 = vadd.f32 %v243_v42, %v242_v43  }
 0x2aa   : > { %v1243_v0 = vmov %v244_v44 }
 0x2ab LB: > { %v275_v50 = vld [vmem:[%s1237_s5 + $0x78] sm:$0xff]  ;;  %v908_v51 = vmov 0.0   ;;  %v274_v52 = vld [vmem:[%s1237_s5 + $0x70] sm:$0xff]  ;;  %s909_s4 = smov 96   ;;  %v273_v53 = vld [vmem:[%s1237_s5 + $0x68] sm:$0xff]  ;;  %vm910_vm3 = vmmov 0   ;;  %s900_s18 = sphi %s1090_s18, %s257_s18   ;;  %v896_v46 = vphi %v251_v46, %v621_v46   ;;  %v892_v44 = vphi %v244_v44, %v458_v44  }
 0x2ac   : > { %728 = vmatprep.subr.mxu1 %v908_v51  ;;  %717 = vmatprep.subr.mxu0 %v908_v51  ;;  %v279_v54 = vld [vmem:[%s1238_s6 + $0x18] sm:$0xff]  ;;  %v272_v55 = vld [vmem:[%s1237_s5 + $0x60] sm:$0xff]  ;;  %v278_v56 = vld [vmem:[%s1238_s6 + $0x10] sm:$0xff]  ;;  %s911_s25 = smov 32   ;;  %s912_s26 = smov 64   ;;  %vm548_vm4 = vcmp.lt.s32.totalorder %v1083_v47, 16 }
 0x2ad   : > { %281 = vrot.lane.b32.xlu0 %v892_v44, %s909_s4  ;;  %729 = vmatpush3.msra.mxu1 %v275_v50  ;;  %v277_v57 = vld [vmem:[%s1238_s6 + $0x8] sm:$0xff]  ;;  %v271_v58 = vld [vmem:[%s1237_s5 + $0x58] sm:$0xff]  ;;  %v276_v59 = vld [vmem:[%s1238_s6] sm:$0xff]  ;;  %s620_s30 = sshll.u32 %s900_s18, 3  ;;  %s257_s18 = sadd.s32 1, %s900_s18  }
 0x2ae   : > { %730 = vmatprep.subr.mxu1 %v908_v51  ;;  %760 = vmatprep.mubr.msk.f32.mxu1 %vm910_vm3, %v908_v51  ;;  %v270_v60 = vld [vmem:[%s1237_s5 + $0x50] sm:$0xff]  ;;  %v269_v61 = vld [vmem:[%s1237_s5 + $0x48] sm:$0xff]  ;;  %v268_v62 = vld [vmem:[%s1237_s5 + $0x40] sm:$0xff]  ;;  %s546_s14 = scalar_lea.vmem [#allocation2], %s620_s30  ;;  %p254_p1 = scmp.ge.s32.totalorder %s257_s18, 8  }
 0x2af   : > { %731 = vmatpush3.msra.mxu1 %v274_v52  ;;  %725 = vmatprep.mubr.msk.f32.mxu0 %vm910_vm3, %v908_v51  ;;  %v267_v63 = vld [vmem:[%s1237_s5 + $0x38] sm:$0xff]  ;;  %v266_v0 = vld [vmem:[%s1237_s5 + $0x30] sm:$0xff]  ;;  %v265_v1 = vld [vmem:[%s1237_s5 + $0x28] sm:$0xff] }
 0x2b0   : > { %732 = vmatprep.subr.mxu1 %v908_v51  ;;  %718 = vmatpush3.msra.mxu0 %v279_v54  ;;  %v264_v2 = vld [vmem:[%s1237_s5 + $0x20] sm:$0xff]  ;;  %v263_v3 = vld [vmem:[%s1237_s5 + $0x18] sm:$0xff]  ;;  %v262_v4 = vld [vmem:[%s1237_s5 + $0x10] sm:$0xff] }
 0x2b1   : > { %733 = vmatpush3.msra.mxu1 %v273_v53  ;;  %719 = vmatprep.subr.mxu0 %v908_v51  ;;  %v261_v5 = vld [vmem:[%s1237_s5 + $0x8] sm:$0xff]  ;;  %v260_v6 = vld [vmem:[%s1237_s5] sm:$0xff]  ;;  %v462_v23 = vld [vmem:[%s1240_s8 + $0x18] sm:$0xff] }
 0x2b2   : > { %734 = vmatprep.subr.mxu1 %v908_v51  ;;  %720 = vmatpush3.msra.mxu0 %v278_v56  ;;  %v616_v11 = vld [vmem:[%s1239_s7] ss:$0 sm:$0xff]  ;;  %v461_v24 = vld [vmem:[%s1240_s8 + $0x10] sm:$0xff]  ;;  %v460_v25 = vld [vmem:[%s1240_s8 + $0x8] sm:$0xff] }
 0x2b3   : > { %735 = vmatpush3.msra.mxu1 %v272_v55  ;;  %721 = vmatprep.subr.mxu0 %v908_v51  ;;  %v459_v26 = vld [vmem:[%s1240_s8] sm:$0xff] }
 0x2b4   : > { %736 = vmatprep.subr.mxu1 %v908_v51  ;;  %722 = vmatpush3.msra.mxu0 %v277_v57  ;;  %v618_v33 = vld [vmem:[%s1241_s9] ss:$0 sm:$0xff] }
 0x2b5   : > { %737 = vmatpush3.msra.mxu1 %v271_v58  ;;  %723 = vmatprep.subr.mxu0 %v908_v51 }
 0x2b6   : > { %738 = vmatprep.subr.mxu1 %v908_v51  ;;  %724 = vmatpush3.msra.mxu0 %v276_v59 }
 0x2b7   : > { %739 = vmatpush3.msra.mxu1 %v270_v60  ;;  %763 = vmatprep.subr.mxu0 %v908_v51 }
 0x2b8   : > { %740 = vmatprep.subr.mxu1 %v908_v51 }
 0x2b9   : > { %741 = vmatpush3.msra.mxu1 %v269_v61 }
 0x2ba   : > { %742 = vmatprep.subr.mxu1 %v908_v51 }
 0x2bb   : > { %743 = vmatpush3.msra.mxu1 %v268_v62 }
 0x2bc   : > { %744 = vmatprep.subr.mxu1 %v908_v51 }
 0x2bd   : > { %745 = vmatpush3.msra.mxu1 %v267_v63 }
 0x2be   : > { %746 = vmatprep.subr.mxu1 %v908_v51 }
 0x2bf   : > { %747 = vmatpush3.msra.mxu1 %v266_v0 }
 0x2c0   : > { %748 = vmatprep.subr.mxu1 %v908_v51 }
 0x2c1   : > { %749 = vmatpush3.msra.mxu1 %v265_v1 }
 0x2c2   : > { %750 = vmatprep.subr.mxu1 %v908_v51 }
 0x2c3   : > { %751 = vmatpush3.msra.mxu1 %v264_v2 }
 0x2c4   : > { %752 = vmatprep.subr.mxu1 %v908_v51 }
 0x2c5   : > { %753 = vmatpush3.msra.mxu1 %v263_v3 }
 0x2c6   : > { %754 = vmatprep.subr.mxu1 %v908_v51 }
 0x2c7   : > { %755 = vmatpush3.msra.mxu1 %v262_v4 }
 0x2c8   : > { %756 = vmatprep.subr.mxu1 %v908_v51 }
 0x2c9   : > { %757 = vmatpush3.msra.mxu1 %v261_v5 }
 0x2ca   : > { %758 = vmatprep.subr.mxu1 %v908_v51 }
 0x2cb   : > { %759 = vmatpush3.msra.mxu1 %v260_v6 }
 0x2cc   : > { %761 = vmatmul.mubr.f32.vlgmr.msra.gmra.mxu1 %v896_v46 }
 0x31f   : > { %v282_v7 = vpop.permute.xlu0 %281 }
 0x320   : > { %726 = vmatmul.mubr.msk.f32.vlgmr.msra.gmra.mxu0 %vm69_vm1, %v282_v7 }
 0x321   : > { %771 = vmatprep.mubr.msk.f32.mxu0 %vm910_vm3, %v908_v51  ;;  %764 = vmatpush3.msra.mxu0 %v462_v23 }
 0x322   : > { %765 = vmatprep.subr.mxu0 %v908_v51 }
 0x323   : > { %766 = vmatpush3.msra.mxu0 %v461_v24 }
 0x324   : > { %767 = vmatprep.subr.mxu0 %v908_v51 }
 0x325   : > { %768 = vmatpush3.msra.mxu0 %v460_v25 }
 0x326   : > { %769 = vmatprep.subr.mxu0 %v908_v51 }
 0x327   : > { %770 = vmatpush3.msra.mxu0 %v459_v26 }
 0x38c   : > { %v422_v8 = vpop.f32.mrf.mxu1 }
 0x38e   : > { %v762_v9 = vpop.f32.mrf.mxu1 }
 0x3e0   : > { %v352_v10 = vpop.f32.mrf.mxu0 }
 0x3e1   : > { %v423_v12 = vadd.f32 %v422_v8, %v352_v10 }
 0x3e2   : > { %v727_v13 = vpop.f32.mrf.mxu0 }
 0x3e3   : > { %v433_v14 = vadd.f32 %v616_v11, %v423_v12 }
 0x3e5   : > { %441 = vrot.lane.b32.xlu0 %v433_v14, %s911_s25  ;;  %v617_v15 = vmul.f32 -1.442695, %v433_v14 }
 0x3e7   : > { %834 = vpow2.f32 %v617_v15 }
 0x3f4   : > { %v835_v16 = vpop.eup %834 }
 0x3f5   : > { %v437_v17 = vadd.f32 1.0, %v835_v16 }
 0x3f7   : > { %836 = vrcp.f32 %v437_v17 }
 0x404   : > { %v837_v18 = vpop.eup %836 }
 0x405   : > { %v451_v28 = vsub.f32 1.0, %v837_v18  ;;  %v457_v30 = vmul.f32 %v892_v44, %v837_v18 }
 0x457   : > { %v442_v19 = vpop.permute.xlu0 %441 }
 0x458   : > { %v444_v20 = vmul.f32 %v837_v18, %v442_v19 }
 0x45a   : > { %446 = vrot.lane.b32.xlu1 %v444_v20, %s912_s26 }
 0x4cc   : > { %v447_v21 = vpop.permute.xlu1 %446 }
 0x4cd   : > { %v449_v22 = vadd.f32 %v447_v21, %v433_v14 }
 0x4cf   : > { %838 = vtanh.f32 %v449_v22 }
 0x4dc   : > { %v839_v27 = vpop.eup %838 }
 0x4dd   : > { %453 = vrot.lane.b32.xlu1 %v839_v27, %s909_s4 }
 0x54f   : > { %v454_v29 = vpop.permute.xlu1 %453 }
 0x550   : > { %v456_v31 = vmul.f32 %v454_v29, %v451_v28 }
 0x552   : > { %v458_v44 = vadd.f32 %v457_v30, %v456_v31  }
 0x554   : > { %471 = vrot.lane.b32.xlu0 %v458_v44, %s909_s4  ;;  %s913_s4 = smov (%p254_p1), [#allocation2]  }
 0x555   :  { %s576_s15 = sshll.u32 (%p254_p1), %s913_s4, 4  ;;  %s577_s15 = int_to_ptr.vmem [resolvable:$true] %s576_s15 }
 0x556   :  { %s840_s16 = scalar_lea.vmem (%p254_p1), %s577_s15, 1024  ;;  %p845_p3 = scmp.lt.s32.totalorder (%p254_p1), %s577_s15, %s577_s15 }
 0x557   :  { %p841_p2 = scmp.ne.s32.totalorder (%p254_p1), %s577_s15, %s840_s16  ;;  %p846_p4 = scmp.lt.s32.totalorder (%p254_p1), %s840_s16, %s840_s16 }
 0x559   :  { %p847_p5 = por (%p254_p1), %p846_p4, %p845_p3 }
 0x55b   :  { %p848_p6 = pnand (%p254_p1), %p847_p5, %p841_p2 }
 0x5c6   : > { %v472_v32 = vpop.permute.xlu0 %471 }
 0x5c7   : > { %772 = vmatmul.mubr.msk.f32.vlgmr.msra.gmra.mxu0 %vm69_vm1, %v472_v32 }
 0x687   : > { %v541_v34 = vpop.f32.mrf.mxu0 }
 0x688   : > { %v542_v35 = vadd.f32 %v618_v33, %v541_v34 }
 0x689   : > { %v773_v36 = vpop.f32.mrf.mxu0 }
 0x68a   : > { %547 = vst [vmem:[%s546_s14] sm:$0xff] %v542_v35  ;;  %v549_v37 = vsel %vm548_vm4, %v542_v35, -inf }
 0x68b   : > { %550 = vmax.xlane.f32.xlu1 %v549_v37 }
 0x714   : > { %v551_v38 = vpop.xlane.xlu1 %550 }
 0x715   : > { %vm552_vm5 = vcmp.eq.f32.partialorder %v549_v37, %v551_v38 }
 0x716   : > { %v553_v39 = vsel %vm552_vm5, %v1083_v47, 128 }
 0x717   : > { %v555_v40 = vshra.s32 %v553_v39, 16  ;;  %v554_v42 = vand.u32 65535, %v553_v39 }
 0x719   : > { %v557_v41 = vcvt.s32.f32 %v555_v40  ;;  %v556_v43 = vcvt.s32.f32 %v554_v42 }
 0x71b   : > { %558 = vmin.xlane.f32.xlu0 %v557_v41 }
 0x7a4   : > { %v559_v45 = vpop.xlane.xlu0 %558 }
 0x7a5   : > { %vm560_vm6 = vcmp.eq.f32.partialorder %v557_v41, %v559_v45  ;;  %v565_v48 = vcvt.f32.s32 %v559_v45 }
 0x7a6   : > { %v561_v46 = vsel %vm560_vm6, %v556_v43, inf }
 0x7a7   : > { %562 = vmin.xlane.f32.xlu0 %v561_v46  ;;  %v566_v50 = vshll.u32 %v565_v48, 16 }
 0x830   : > { %v563_v49 = vpop.xlane.xlu0 %562 }
 0x831   : > { %v564_v52 = vcvt.f32.s32 %v563_v49 }
 0x832   :  { %256 = sbr.rel (!%p254_p1) target bundleno = 683 (0x2ab), region = 87 }
 0x833   : > { %v567_v53 = vadd.s32 %v566_v50, %v564_v52 }
 0x835   : > { %vm568_vm7 = vcmp.eq.s32.totalorder %v1083_v47, %v567_v53 }
 0x836   : > { %v621_v46 = vsel %vm568_vm7, 1.0, %v908_v51  }
 0x837   :  { %851 = shalt.err (!%p848_p6)
}
 0x838   :  { %s914_s17 = smov 128   ;;  %s915_s19 = smov 8  }
 0x839   :  { %582 = dma.vmem_to_hbm [thread:$0]  %s577_s15, 1024, %s1242_s10, [#allocation3], %s914_s17, %s914_s17, %s915_s19  }
 0x83a   :  { %880 = dma.done.wait [#allocation3], 1024  }
 0x83b   :  { %881 = vsyncadd [#allocation3], 4294966272 }
 0x83c   :  { %586 = vsyncpa [#allocation3], 1 }

</bundles_post_ra>
